<compile_context>
chip_gen: v6e
topology: v6e:2x2x1
jax: 0.10.0
libtpu: 0.0.40
codegen_flags: <defaults>
</compile_context>

<pallas_src>
import math

import jax
import jax.numpy as jnp
from jax.experimental import pallas as pl
from jax.experimental.pallas import tpu as pltpu


def bilinear_kernel(x_ref, y_ref, uw_ref, ub_ref, vw_ref, vb_ref,
                    pw_ref, pb_ref, o_ref):
    """o = P(tanh(U(x) * V(y))) for one batch tile."""
    cdt = uw_ref.dtype
    # U(x), V(y): [TB, D_in] @ [D_in, D_h] on the MXU, f32 accumulation.
    # Activations are cast in-register here (VPU has slack) so the wrapper
    # never does a separate un-fused HBM pass just to change dtype.
    u = jnp.dot(x_ref[...].astype(cdt), uw_ref[...],
                preferred_element_type=jnp.float32) + ub_ref[...]
    v = jnp.dot(y_ref[...].astype(cdt), vw_ref[...],
                preferred_element_type=jnp.float32) + vb_ref[...]
    # Elementwise gate in f32 (v5e VPU/EUP have no bf16 datapath; tanh rides
    # the EUP slot).
    h = jnp.tanh(u * v)
    # P(h): [TB, D_h] @ [D_h, D_out], f32 accumulation, cast to output dtype.
    out = jnp.dot(h.astype(pw_ref.dtype), pw_ref[...],
                  preferred_element_type=jnp.float32) + pb_ref[...]
    o_ref[...] = out.astype(o_ref.dtype)
    # TODO(synk): if this ever becomes compute-bound (large d_h), fuse U/V
    # into one block-diagonal MXU op and align with pltpu.roll.


def _round_up(a, b):
    return ((a + b - 1) // b) * b


def _pick_tb(batch, block_b, sublane):
    """Batch tile size.

    - small batches: one full-batch block (block dims == array dims is always
      legal, no padding, single grid step),
    - large batches: sublane-aligned tiles <= block_b, capped so the grid has
      >= 2 steps (v7x megacore shards the "parallel" axis across its 2 TCs);
      the ragged tail is handled by Pallas partial-block masking.
    """
    if batch <= 256 or batch <= 2 * sublane:
        return batch
    tb = min(block_b, _round_up(pl.cdiv(batch, 2), sublane))
    tb = max(sublane, (tb // sublane) * sublane)
    return tb


def bilinear_forward(x, y, params, *, block_b=4096, compute_dtype=None,
                     out_dtype=None):
    """x, y: [B, input_dim]; returns [B, output_dim].

    Activations stream in their own dtype (pass bf16 inputs to halve HBM
    traffic on any generation); `compute_dtype` sets the MXU input dtype
    (defaults to x.dtype); accumulation is always f32.
    """
    assert x.shape == y.shape and x.ndim == 2
    B, d_in = x.shape
    d_h = params["Uw"].shape[1]      # width of U/V outputs (= output_dim)
    d_out = params["Pw"].shape[1]    # final output width
    assert params["Pw"].shape[0] == d_h

    if compute_dtype is None:
        compute_dtype = x.dtype
    if out_dtype is None:
        out_dtype = x.dtype

    # Weights are tiny (d_in x d_h); a one-off cast here costs a few KB.
    uw = params["Uw"].astype(compute_dtype)
    vw = params["Vw"].astype(compute_dtype)
    pw = params["Pw"].astype(compute_dtype)
    ub = params["Ub"].astype(jnp.float32).reshape(1, d_h)
    vb = params["Vb"].astype(jnp.float32).reshape(1, d_h)
    pb = params["Pb"].astype(jnp.float32).reshape(1, d_out)

    # ---- batch tiling -------------------------------------------------------
    x_isz = jnp.dtype(x.dtype).itemsize
    y_isz = jnp.dtype(y.dtype).itemsize
    o_isz = jnp.dtype(out_dtype).itemsize
    w_isz = jnp.dtype(compute_dtype).itemsize
    # Sublane packing requirement of the narrowest streamed dtype:
    # 8 rows (f32), 16 (bf16), 32 (int8/fp8).
    sublane = max(8, 32 // min(x_isz, y_isz, o_isz))
    tb = _pick_tb(B, block_b, sublane)
    grid = (pl.cdiv(B, tb),)

    # ---- VMEM budget: double-buffered streams + resident weights ------------
    stream_bytes = tb * (d_in * (x_isz + y_isz) + d_out * o_isz)
    resident_bytes = (2 * d_in * d_h + d_h * d_out) * w_isz \
        + (2 * d_h + d_out) * 4
    vmem_limit = int(min(max(4 * stream_bytes + 4 * resident_bytes + (1 << 20),
                             4 << 20),
                         64 << 20))

    cost = pl.CostEstimate(
        flops=int(2 * B * d_in * d_h * 2 + 2 * B * d_h * d_out),
        transcendentals=int(B * d_h),
        bytes_accessed=int(
            B * d_in * (x_isz + y_isz)           # x, y streamed in
            + B * d_out * o_isz                  # output streamed out
            + (2 * d_in * d_h + d_h * d_out) * w_isz   # weights (resident)
            + (2 * d_h + d_out) * 4),            # f32 biases
    )

    act_spec = pl.BlockSpec((tb, d_in), lambda i: (i, 0))

    def resident(shape):
        # Block index constant across the grid -> DMA'd once, stays in VMEM.
        return pl.BlockSpec(shape, lambda i: (0, 0))

    out = pl.pallas_call(
        bilinear_kernel,
        out_shape=jax.ShapeDtypeStruct((B, d_out), out_dtype),
        grid_spec=pltpu.PrefetchScalarGridSpec(
            num_scalar_prefetch=0,
            grid=grid,
            in_specs=[
                act_spec,                    # x tile (streamed)
                act_spec,                    # y tile (streamed)
                resident((d_in, d_h)),       # Uw (resident)
                resident((1, d_h)),          # Ub
                resident((d_in, d_h)),       # Vw
                resident((1, d_h)),          # Vb
                resident((d_h, d_out)),      # Pw
                resident((1, d_out)),        # Pb
            ],
            out_specs=pl.BlockSpec((tb, d_out), lambda i: (i, 0)),
        ),
        compiler_params=pltpu.CompilerParams(
            # batch axis is independent -> megacore-shardable on v7x,
            # harmless on single-TC v5e/v6e.
            dimension_semantics=("parallel",),
            vmem_limit_bytes=vmem_limit,
        ),
        cost_estimate=cost,
    )(x, y, uw, ub, vw, vb, pw, pb)

    return out


def init_params(key, input_dim, output_dim, dtype=jnp.float32):
    """nn.Linear-style init (uniform +/- 1/sqrt(fan_in)); weights stored
    pre-transposed as [in_dim, out_dim]."""
    keys = jax.random.split(key, 6)

    def u(k, shape, fan_in):
        b = 1.0 / math.sqrt(fan_in)
        return jax.random.uniform(k, shape, dtype, minval=-b, maxval=b)

    # NOTE: the PyTorch module declares P = nn.Linear(input_dim, output_dim)
    # but feeds it tanh(U(x)*V(y)) which has width output_dim, so the forward
    # only shape-checks when input_dim == output_dim.  Pw is stored with its
    # actually-consumed shape (output_dim, output_dim); identical when the
    # dims match (the only valid configuration of the original module).
    return {
        "Uw": u(keys[0], (input_dim, output_dim), input_dim),
        "Ub": u(keys[1], (1, output_dim), input_dim),
        "Vw": u(keys[2], (input_dim, output_dim), input_dim),
        "Vb": u(keys[3], (1, output_dim), input_dim),
        "Pw": u(keys[4], (output_dim, output_dim), output_dim),
        "Pb": u(keys[5], (1, output_dim), output_dim),
    }


def bilinear_ref(x, y, params):
    u = x @ params["Uw"] + params["Ub"]
    v = y @ params["Vw"] + params["Vb"]
    return jnp.tanh(u * v) @ params["Pw"] + params["Pb"]


if __name__ == "__main__":
    # The original forward only shape-checks when input_dim == output_dim.
    input_dim, output_dim = 32, 32

    key = jax.random.PRNGKey(0)
    kx, ky, kp, kx2, ky2 = jax.random.split(key, 5)
    params = init_params(kp, input_dim, output_dim)

    # ---- small-batch f32 path (single full-batch block, no padding) --------
    batch = 10
    x = jax.random.normal(kx, (batch, input_dim), jnp.float32)
    y = jax.random.normal(ky, (batch, input_dim), jnp.float32)
    ref = bilinear_ref(x, y, params)
    out = jax.block_until_ready(bilinear_forward(x, y, params))
    assert out.shape == (batch, output_dim)
    assert jnp.allclose(out, ref, atol=1e-2, rtol=1e-2)

    # ---- multi-tile f32 path (grid of 2 with a ragged tail) ----------------
    batch2 = 300
    x2 = jax.random.normal(kx2, (batch2, input_dim), jnp.float32)
    y2 = jax.random.normal(ky2, (batch2, input_dim), jnp.float32)
    ref2 = bilinear_ref(x2, y2, params)
    out2 = jax.block_until_ready(bilinear_forward(x2, y2, params))
    assert out2.shape == (batch2, output_dim)
    assert jnp.allclose(out2, ref2, atol=1e-2, rtol=1e-2)

    # ---- bf16-streamed path (caller supplies bf16 activations; halves HBM
    # traffic on all generations; gate and accumulation stay f32) ------------
    x_bf = x.astype(jnp.bfloat16)
    y_bf = y.astype(jnp.bfloat16)
    out_bf = jax.block_until_ready(
        bilinear_forward(x_bf, y_bf, params, compute_dtype=jnp.bfloat16))
    assert out_bf.shape == (batch, output_dim)
    assert jnp.allclose(out_bf.astype(jnp.float32), ref, atol=2e-1, rtol=2e-1)

    print("KERNEL_OK")
</pallas_src>

<mosaic_0001>
module attributes {stable_mosaic.version = 11 : i64} {
  func.func @bilinear_kernel(%arg0: i32, %arg1: memref<10x32xf32, #tpu.memory_space<vmem>>, %arg2: memref<10x32xf32, #tpu.memory_space<vmem>>, %arg3: memref<32x32xf32, #tpu.memory_space<vmem>>, %arg4: memref<1x32xf32, #tpu.memory_space<vmem>>, %arg5: memref<32x32xf32, #tpu.memory_space<vmem>>, %arg6: memref<1x32xf32, #tpu.memory_space<vmem>>, %arg7: memref<32x32xf32, #tpu.memory_space<vmem>>, %arg8: memref<1x32xf32, #tpu.memory_space<vmem>>, %arg9: memref<10x32xf32, #tpu.memory_space<vmem>>) attributes {dimension_semantics = [#tpu.dimension_semantics<parallel>], iteration_bounds = array<i64: 1>, scalar_prefetch = 0 : i64, scratch_operands = 0 : i64, tpu.core_type = #tpu.core_type<tc>, window_params = [{transform_indices = @transform_0, window_bounds = array<i64: 10, 32>}, {transform_indices = @transform_1, window_bounds = array<i64: 10, 32>}, {pipeline_mode = #tpu.pipeline_mode<synchronous>, transform_indices = @transform_2, window_bounds = array<i64: 32, 32>}, {pipeline_mode = #tpu.pipeline_mode<synchronous>, transform_indices = @transform_3, window_bounds = array<i64: 1, 32>}, {pipeline_mode = #tpu.pipeline_mode<synchronous>, transform_indices = @transform_4, window_bounds = array<i64: 32, 32>}, {pipeline_mode = #tpu.pipeline_mode<synchronous>, transform_indices = @transform_5, window_bounds = array<i64: 1, 32>}, {pipeline_mode = #tpu.pipeline_mode<synchronous>, transform_indices = @transform_6, window_bounds = array<i64: 32, 32>}, {pipeline_mode = #tpu.pipeline_mode<synchronous>, transform_indices = @transform_7, window_bounds = array<i64: 1, 32>}, {transform_indices = @transform_8, window_bounds = array<i64: 10, 32>}]} {
    %c0 = arith.constant 0 : index
    %c0_0 = arith.constant 0 : index
    %0 = vector.load %arg1[%c0, %c0_0] : memref<10x32xf32, #tpu.memory_space<vmem>>, vector<10x32xf32>
    %c0_1 = arith.constant 0 : index
    %c0_2 = arith.constant 0 : index
    %1 = vector.load %arg3[%c0_1, %c0_2] : memref<32x32xf32, #tpu.memory_space<vmem>>, vector<32x32xf32>
    %cst = arith.constant dense<0.000000e+00> : vector<10x32xf32>
    %2 = tpu.matmul %0, %1, %cst {dimension_numbers = #tpu.dot_dimension_numbers<[1], [0], [0], [1], [0, 0, 1, 1], [], []>} : vector<10x32xf32>, vector<32x32xf32>, vector<10x32xf32> -> vector<10x32xf32>
    %c0_3 = arith.constant 0 : index
    %c0_4 = arith.constant 0 : index
    %3 = vector.load %arg4[%c0_3, %c0_4] : memref<1x32xf32, #tpu.memory_space<vmem>>, vector<1x32xf32>
    %4 = vector.broadcast %3 : vector<1x32xf32> to vector<10x32xf32>
    %5 = arith.addf %2, %4 : vector<10x32xf32>
    %c0_5 = arith.constant 0 : index
    %c0_6 = arith.constant 0 : index
    %6 = vector.load %arg2[%c0_5, %c0_6] : memref<10x32xf32, #tpu.memory_space<vmem>>, vector<10x32xf32>
    %c0_7 = arith.constant 0 : index
    %c0_8 = arith.constant 0 : index
    %7 = vector.load %arg5[%c0_7, %c0_8] : memref<32x32xf32, #tpu.memory_space<vmem>>, vector<32x32xf32>
    %cst_9 = arith.constant dense<0.000000e+00> : vector<10x32xf32>
    %8 = tpu.matmul %6, %7, %cst_9 {dimension_numbers = #tpu.dot_dimension_numbers<[1], [0], [0], [1], [0, 0, 1, 1], [], []>} : vector<10x32xf32>, vector<32x32xf32>, vector<10x32xf32> -> vector<10x32xf32>
    %c0_10 = arith.constant 0 : index
    %c0_11 = arith.constant 0 : index
    %9 = vector.load %arg6[%c0_10, %c0_11] : memref<1x32xf32, #tpu.memory_space<vmem>>, vector<1x32xf32>
    %10 = vector.broadcast %9 : vector<1x32xf32> to vector<10x32xf32>
    %11 = arith.addf %8, %10 : vector<10x32xf32>
    %12 = arith.mulf %5, %11 : vector<10x32xf32>
    %13 = math.tanh %12 : vector<10x32xf32>
    %c0_12 = arith.constant 0 : index
    %c0_13 = arith.constant 0 : index
    %14 = vector.load %arg7[%c0_12, %c0_13] : memref<32x32xf32, #tpu.memory_space<vmem>>, vector<32x32xf32>
    %cst_14 = arith.constant dense<0.000000e+00> : vector<10x32xf32>
    %15 = tpu.matmul %13, %14, %cst_14 {dimension_numbers = #tpu.dot_dimension_numbers<[1], [0], [0], [1], [0, 0, 1, 1], [], []>} : vector<10x32xf32>, vector<32x32xf32>, vector<10x32xf32> -> vector<10x32xf32>
    %c0_15 = arith.constant 0 : index
    %c0_16 = arith.constant 0 : index
    %16 = vector.load %arg8[%c0_15, %c0_16] : memref<1x32xf32, #tpu.memory_space<vmem>>, vector<1x32xf32>
    %17 = vector.broadcast %16 : vector<1x32xf32> to vector<10x32xf32>
    %18 = arith.addf %15, %17 : vector<10x32xf32>
    %c0_17 = arith.constant 0 : index
    %c0_18 = arith.constant 0 : index
    %19 = vector.load %arg9[%c0_17, %c0_18] : memref<10x32xf32, #tpu.memory_space<vmem>>, vector<10x32xf32>
    tpu.vector_store %arg9[%c0_17, %c0_18], %18 {strides = array<i32>} : memref<10x32xf32, #tpu.memory_space<vmem>>, vector<10x32xf32>,
    return
  }
  func.func @transform_0(%arg0: i32) -> (i32, i32) {
    %c0_i32 = arith.constant 0 : i32
    %c0_i32_0 = arith.constant 0 : i32
    return %arg0, %c0_i32 : i32, i32
  }
  func.func @transform_1(%arg0: i32) -> (i32, i32) {
    %c0_i32 = arith.constant 0 : i32
    %c0_i32_0 = arith.constant 0 : i32
    return %arg0, %c0_i32 : i32, i32
  }
  func.func @transform_2(%arg0: i32) -> (i32, i32) {
    %c0_i32 = arith.constant 0 : i32
    %c0_i32_0 = arith.constant 0 : i32
    %c0_i32_1 = arith.constant 0 : i32
    return %c0_i32, %c0_i32_0 : i32, i32
  }
  func.func @transform_3(%arg0: i32) -> (i32, i32) {
    %c0_i32 = arith.constant 0 : i32
    %c0_i32_0 = arith.constant 0 : i32
    %c0_i32_1 = arith.constant 0 : i32
    return %c0_i32, %c0_i32_0 : i32, i32
  }
  func.func @transform_4(%arg0: i32) -> (i32, i32) {
    %c0_i32 = arith.constant 0 : i32
    %c0_i32_0 = arith.constant 0 : i32
    %c0_i32_1 = arith.constant 0 : i32
    return %c0_i32, %c0_i32_0 : i32, i32
  }
  func.func @transform_5(%arg0: i32) -> (i32, i32) {
    %c0_i32 = arith.constant 0 : i32
    %c0_i32_0 = arith.constant 0 : i32
    %c0_i32_1 = arith.constant 0 : i32
    return %c0_i32, %c0_i32_0 : i32, i32
  }
  func.func @transform_6(%arg0: i32) -> (i32, i32) {
    %c0_i32 = arith.constant 0 : i32
    %c0_i32_0 = arith.constant 0 : i32
    %c0_i32_1 = arith.constant 0 : i32
    return %c0_i32, %c0_i32_0 : i32, i32
  }
  func.func @transform_7(%arg0: i32) -> (i32, i32) {
    %c0_i32 = arith.constant 0 : i32
    %c0_i32_0 = arith.constant 0 : i32
    %c0_i32_1 = arith.constant 0 : i32
    return %c0_i32, %c0_i32_0 : i32, i32
  }
  func.func @transform_8(%arg0: i32) -> (i32, i32) {
    %c0_i32 = arith.constant 0 : i32
    %c0_i32_0 = arith.constant 0 : i32
    return %arg0, %c0_i32 : i32, i32
  }
}

</mosaic_0001>

<bundles_post_ra>
// kernel: tpu_custom_call.1
= control target key start
LH: loop header
LB: loop body
LE: loop exit
PB: predicated region body
PF: predicated region fallthrough
CT: control target
= control target key end

     0   :  { %13 = vsyncpa [#allocation3], 0  ;;  %s710_s0 = inlined_call_operand.hbm [shape: f32[10,32], index: 0, kind: input, shape index: {}]   ;;  %s711_s1 = inlined_call_operand.hbm [shape: f32[10,32], index: 1, kind: input, shape index: {}]   ;;  %s712_s2 = inlined_call_operand.hbm [shape: f32[32,32], index: 2, kind: input, shape index: {}]   ;;  %s713_s3 = inlined_call_operand.vmem [shape: f32[1,32], index: 3, kind: input, shape index: {}]   ;;  %s714_s4 = inlined_call_operand.hbm [shape: f32[32,32], index: 4, kind: input, shape index: {}]   ;;  %s715_s5 = inlined_call_operand.vmem [shape: f32[1,32], index: 5, kind: input, shape index: {}]   ;;  %s716_s6 = inlined_call_operand.hbm [shape: f32[32,32], index: 6, kind: input, shape index: {}]   ;;  %s717_s7 = inlined_call_operand.vmem [shape: f32[1,32], index: 7, kind: input, shape index: {}]   ;;  %s718_s8 = inlined_call_operand.hbm [shape: f32[10,32], index: 8, kind: output, shape index: {}]  }
   0x1   :  { %14 = vsyncpa [#allocation6], 0 }
   0x2   :  { %15 = vsyncpa [#allocation9], 0 }
   0x3   :  { %16 = vsyncpa [#allocation4], 0  ;;  %s605_s27 = smov [#allocation5]   ;;  %s606_s29 = smov [#allocation8]  }
   0x4   :  { %s34_s28 = sshll.u32 %s605_s27, 4  ;;  %s60_s30 = sshll.u32 %s606_s29, 4  ;;  %s35_s28 = int_to_ptr.vmem [resolvable:$true] %s34_s28  ;;  %s61_s30 = int_to_ptr.vmem [resolvable:$true] %s60_s30 }
   0x5   :  { %s485_s9 = scalar_lea.vmem %s35_s28, 256  ;;  %p490_p1 = scmp.lt.s32.totalorder %s35_s28, %s35_s28 }
   0x6   :  { %p486_p0 = scmp.ne.s32.totalorder %s35_s28, %s485_s9  ;;  %p491_p2 = scmp.lt.s32.totalorder %s485_s9, %s485_s9 }
   0x8   :  { %p492_p3 = por %p491_p2, %p490_p1 }
   0xa   :  { %p493_p4 = pnand %p492_p3, %p486_p0 }
   0xc   :  { %496 = shalt.err (!%p493_p4)
}
   0xd   :  { %s607_s10 = smov 128   ;;  %s608_s11 = smov 8  }
   0xe   :  { %40 = dma.hbm_to_vmem [thread:$0]  %s711_s1, 256, %s35_s28, [#allocation6], %s607_s10, %s607_s10, %s608_s11  }
   0xf   :  { %s505_s14 = scalar_lea.vmem %s61_s30, 512  ;;  %p510_p6 = scmp.lt.s32.totalorder %s61_s30, %s61_s30 }
  0x10   :  { %p506_p5 = scmp.ne.s32.totalorder %s61_s30, %s505_s14  ;;  %p511_p7 = scmp.lt.s32.totalorder %s505_s14, %s505_s14 }
  0x12   :  { %p512_p8 = por %p511_p7, %p510_p6 }
  0x14   :  { %p513_p9 = pnand %p512_p8, %p506_p5 }
  0x16   :  { %516 = shalt.err (!%p513_p9)
}
  0x17   :  { %66 = dma.hbm_to_vmem [thread:$0]  %s714_s4, 512, %s61_s30, [#allocation9], %s607_s10, %s607_s10, %s608_s11  }
  0x18   :  { %s609_s17 = smov [#allocation2]   ;;  %s610_s19 = smov [#allocation7]  }
  0x19   :  { %s22_s18 = sshll.u32 %s609_s17, 4  ;;  %s46_s20 = sshll.u32 %s610_s19, 4  ;;  %s23_s18 = int_to_ptr.vmem [resolvable:$true] %s22_s18  ;;  %s47_s20 = int_to_ptr.vmem [resolvable:$true] %s46_s20 }
  0x1a   :  { %s525_s1 = scalar_lea.vmem %s23_s18, 256  ;;  %p530_p11 = scmp.lt.s32.totalorder %s23_s18, %s23_s18 }
  0x1b   :  { %p526_p10 = scmp.ne.s32.totalorder %s23_s18, %s525_s1  ;;  %p531_p12 = scmp.lt.s32.totalorder %s525_s1, %s525_s1 }
  0x1d   :  { %p532_p13 = por %p531_p12, %p530_p11 }
  0x1f   :  { %p533_p0 = pnand %p532_p13, %p526_p10 }
  0x21   :  { %536 = shalt.err (!%p533_p0)
}
  0x22   :  { %28 = dma.hbm_to_vmem [thread:$0]  %s710_s0, 256, %s23_s18, [#allocation3], %s607_s10, %s607_s10, %s608_s11  }
  0x23   :  { %s545_s4 = scalar_lea.vmem %s47_s20, 512  ;;  %p550_p2 = scmp.lt.s32.totalorder %s47_s20, %s47_s20 }
  0x24   :  { %p546_p1 = scmp.ne.s32.totalorder %s47_s20, %s545_s4  ;;  %p551_p3 = scmp.lt.s32.totalorder %s545_s4, %s545_s4 }
  0x26   :  { %p552_p4 = por %p551_p3, %p550_p2 }
  0x28   :  { %p553_p5 = pnand %p552_p4, %p546_p1 }
  0x2a   :  { %556 = shalt.err (!%p553_p5)
}
  0x2b   :  { %52 = dma.hbm_to_vmem [thread:$0]  %s712_s2, 512, %s47_s20, [#allocation6], %s607_s10, %s607_s10, %s608_s11  }
  0x2c   :  { %s611_s25 = smov [#allocation10]  }
  0x2d   :  { %s74_s26 = sshll.u32 %s611_s25, 4  ;;  %s75_s26 = int_to_ptr.vmem [resolvable:$true] %s74_s26 }
  0x2e   :  { %s565_s27 = scalar_lea.vmem %s75_s26, 512  ;;  %p570_p7 = scmp.lt.s32.totalorder %s75_s26, %s75_s26 }
  0x2f   :  { %p566_p6 = scmp.ne.s32.totalorder %s75_s26, %s565_s27  ;;  %p571_p8 = scmp.lt.s32.totalorder %s565_s27, %s565_s27 }
  0x31   :  { %p572_p9 = por %p571_p8, %p570_p7 }
  0x33   :  { %p573_p10 = pnand %p572_p9, %p566_p6 }
  0x35   :  { %576 = shalt.err (!%p573_p10)
}
  0x36   :  { %80 = dma.hbm_to_vmem [thread:$0]  %s716_s6, 512, %s75_s26, [#allocation9], %s607_s10, %s607_s10, %s608_s11  }
  0x37   :  { %597 = dma.done.wait [#allocation3], 256  }
  0x38   :  { %598 = vsyncadd [#allocation3], 4294967040 }
  0x39   :  { %599 = dma.done.wait [#allocation6], 768  }
  0x3a   :  { %600 = vsyncadd [#allocation6], 4294966528 }
  0x3b   :  { %601 = dma.done.wait [#allocation9], 1024  }
  0x3c   :  { %602 = vsyncadd [#allocation9], 4294966272  ;;  %v103_v0 = vld [vmem:[#allocation7 + $0x18] sm:$0xff]  ;;  %v102_v2 = vld [vmem:[#allocation7 + $0x10] sm:$0xff]  ;;  %vm111_vm0 = vcmask 261120   ;;  %vm384_vm1 = vcmask 254976  }
  0x3d   :  { %v198_v1 = vld [vmem:[#allocation8 + $0x18] sm:$0xff]  ;;  %432 = vmatprep.subr.mxu0 %v103_v0  ;;  %v197_v3 = vld [vmem:[#allocation8 + $0x10] sm:$0xff]  ;;  %v101_v4 = vld [vmem:[#allocation7 + $0x8] sm:$0xff]  ;;  %s612_s9 = smov [#allocation11]  }
  0x3e   :  { %443 = vmatprep.subr.mxu1 %v198_v1  ;;  %433 = vmatpush3.msra.mxu0 %v103_v0  ;;  %v196_v5 = vld [vmem:[#allocation8 + $0x8] sm:$0xff]  ;;  %v100_v6 = vld [vmem:[#allocation7] sm:$0xff]  ;;  %v193_v9 = vld [vmem:[#allocation5] sm:$0xff]  ;;  %s391_s12 = sshll.u32 %s612_s9, 4  ;;  %s392_s12 = int_to_ptr.vmem [resolvable:$true] %s391_s12 }
  0x3f   :  { %444 = vmatpush3.msra.mxu1 %v198_v1  ;;  %434 = vmatprep.subr.mxu0 %v102_v2  ;;  %v195_v7 = vld [vmem:[#allocation8] sm:$0xff]  ;;  %v99_v10 = vld [vmem:[#allocation2 + $0x8] sm:$0x3]  ;;  %v194_v11 = vld [vmem:[#allocation5 + $0x8] sm:$0x3]  ;;  %s577_s13 = scalar_lea.vmem %s392_s12, 256  ;;  %p582_p12 = scmp.lt.s32.totalorder %s392_s12, %s392_s12 }
  0x40   :  { %445 = vmatprep.subr.mxu1 %v197_v3  ;;  %435 = vmatpush3.msra.mxu0 %v102_v2  ;;  %v98_v8 = vld [vmem:[#allocation2] sm:$0xff]  ;;  %v294_v12 = vld [vmem:[#allocation10 + $0x18] sm:$0xff]  ;;  %v293_v13 = vld [vmem:[#allocation10 + $0x10] sm:$0xff]  ;;  %p578_p11 = scmp.ne.s32.totalorder %s392_s12, %s577_s13  ;;  %p583_p13 = scmp.lt.s32.totalorder %s577_s13, %s577_s13 }
  0x41   :  { %446 = vmatpush3.msra.mxu1 %v197_v3  ;;  %436 = vmatprep.subr.mxu0 %v101_v4  ;;  %v292_v14 = vld [vmem:[#allocation10 + $0x8] sm:$0xff]  ;;  %v291_v15 = vld [vmem:[#allocation10] sm:$0xff] }
  0x42   :  { %447 = vmatprep.subr.mxu1 %v196_v5  ;;  %437 = vmatpush3.msra.mxu0 %v101_v4  ;;  %v405_v16 = vld [vmem:[%s713_s3] ss:$0 sm:$0xff]  ;;  %p584_p0 = por %p583_p13, %p582_p12 }
  0x43   :  { %448 = vmatpush3.msra.mxu1 %v196_v5  ;;  %438 = vmatprep.subr.mxu0 %v100_v6  ;;  %v408_v17 = vld [vmem:[%s715_s5] ss:$0 sm:$0xff] }
  0x44   :  { %449 = vmatprep.subr.mxu1 %v195_v7  ;;  %439 = vmatpush3.msra.mxu0 %v100_v6  ;;  %v411_v30 = vld [vmem:[%s717_s7] ss:$0 sm:$0xff]  ;;  %p585_p1 = pnand %p584_p0, %p578_p11 }
  0x45   :  { %440 = vmatprep.mubr.msk.f32.mxu0 %vm111_vm0, %v98_v8  ;;  %450 = vmatpush3.msra.mxu1 %v195_v7 }
  0x46   :  { %451 = vmatprep.mubr.msk.f32.mxu1 %vm111_vm0, %v193_v9  ;;  %441 = vmatmul.mubr.msk.f32.vlgmr.msra.gmra.mxu0 %vm111_vm0, %v99_v10 }
  0x47   :  { %452 = vmatmul.mubr.msk.f32.vlgmr.msra.gmra.mxu1 %vm111_vm0, %v194_v11  ;;  %454 = vmatprep.subr.mxu0 %v294_v12 }
  0x48   :  { %455 = vmatpush3.msra.mxu0 %v294_v12 }
  0x49   :  { %456 = vmatprep.subr.mxu0 %v293_v13 }
  0x4a   :  { %457 = vmatpush3.msra.mxu0 %v293_v13 }
  0x4b   :  { %458 = vmatprep.subr.mxu0 %v292_v14 }
  0x4c   :  { %459 = vmatpush3.msra.mxu0 %v292_v14 }
  0x4d   :  { %460 = vmatprep.subr.mxu0 %v291_v15 }
  0x4e   :  { %461 = vmatpush3.msra.mxu0 %v291_v15 }
 0x106   :  { %v442_v18 = vpop.f32.mrf.mxu0 }
 0x107   :  { %v453_v19 = vpop.f32.mrf.mxu1  ;;  %v190_v20 = vadd.f32 %v442_v18, %v405_v16 }
 0x108   :  { %v284_v21 = vadd.f32 %v453_v19, %v408_v17  ;;  %v184_v22 = vpop.f32.mrf.mxu0 }
 0x109   :  { %v278_v23 = vpop.f32.mrf.mxu1  ;;  %v185_v24 = vadd.f32 %v405_v16, %v184_v22 }
 0x10a   :  { %v279_v25 = vadd.f32 %v408_v17, %v278_v23  ;;  %v288_v26 = vmul.f32 %v284_v21, %v190_v20 }
 0x10c   :  { %v287_v27 = vmul.f32 %v279_v25, %v185_v24 }
 0x10e   :  { %473 = vtanh.f32 %v287_v27 }
 0x10f   :  { %475 = vtanh.f32 %v288_v26 }
 0x11b   :  { %v474_v28 = vpop.eup %473 }
 0x11c   :  { %v476_v29 = vpop.eup %475  ;;  %462 = vmatprep.mubr.msk.f32.mxu0 %vm111_vm0, %v474_v28 }
 0x11d   :  { %463 = vmatmul.mubr.msk.f32.vlgmr.msra.gmra.mxu0 %vm111_vm0, %v476_v29 }
 0x1dd   :  { %v464_v31 = vpop.f32.mrf.mxu0 }
 0x1de   :  { %v380_v32 = vadd.f32 %v464_v31, %v411_v30 }
 0x1df   :  { %v374_v33 = vpop.f32.mrf.mxu0 }
 0x1e0   :  { %v375_v34 = vadd.f32 %v411_v30, %v374_v33  ;;  %385 = vst.msk [vmem:[#allocation11 + $0x8] sm:$0x3] %vm384_vm1, %v380_v32 }
 0x1e2   :  { %383 = vst.msk [vmem:[#allocation11] sm:$0xff] %vm111_vm0, %v375_v34 }
 0x1e3   :  { %588 = shalt.err (!%p585_p1)
}
 0x1e4   :  { %397 = dma.vmem_to_hbm [thread:$0]  %s392_s12, 256, %s718_s8, [#allocation4], %s607_s10, %s607_s10, %s608_s11  }
 0x1e5   :  { %603 = dma.done.wait [#allocation4], 256  }
 0x1e6   :  { %604 = vsyncadd [#allocation4], 4294967040 }
 0x1e7   :  { %401 = vsyncpa [#allocation3], 1 }
 0x1e8   :  { %402 = vsyncpa [#allocation6], 1 }
 0x1e9   :  { %403 = vsyncpa [#allocation9], 1 }
 0x1ea   :  { %404 = vsyncpa [#allocation4], 1 }

</bundles_post_ra>
